<compile_context>
chip_gen: v6e
topology: v6e:2x2x1
jax: 0.10.0
libtpu: 0.0.40
codegen_flags: <defaults>
</compile_context>

<pallas_src>
import functools

import jax
import jax.numpy as jnp
from jax.experimental import pallas as pl
from jax.experimental.pallas import tpu as pltpu


def _round_up(x, m):
    return (x + m - 1) // m * m


def _dense_stack_kernel(x_ref, w_ref, b_ref, o_ref, *, num_layers, compute_dtype):
    """Fused MLP:  h = tanh(h @ W_l + b_l) for l < L-1;  out = h @ W_{L-1} + b_{L-1}.

    x_ref: (tb, P)   activation tile (lane-dense, P % 128 == 0)
    w_ref: (L, P, P) all layer weights, resident in VMEM for the whole step
    b_ref: (L, 1, P) all layer biases, resident in VMEM for the whole step
    o_ref: (tb, P)   output tile
    """
    h = x_ref[...].astype(jnp.float32)
    # Static unroll over layers (L is small); w_ref[l]/b_ref[l] are static
    # slices of VMEM-resident buffers -> loaded once per grid step, no HBM
    # traffic inside the loop.
    for l in range(num_layers):
        w = w_ref[l]                                   # (P, P)
        b = b_ref[l].astype(jnp.float32)               # (1, P)
        acc = jnp.dot(h.astype(compute_dtype), w.astype(compute_dtype),
                      preferred_element_type=jnp.float32)   # MXU, f32 accumulate
        acc = acc + b                                   # f32 epilogue (VPU)
        h = jnp.tanh(acc) if l < num_layers - 1 else acc    # tanh on EUP
    o_ref[...] = h.astype(o_ref.dtype)


def dense_model_forward(params, x, *, compute_dtype=jnp.float32, block_b=128):
    """Forward pass matching DenseModel.forward (eval-mode dropout = identity).

    params: list of (w, b) with w stored as [in_dim, out_dim]
            (transpose of PyTorch's [out, in]); x: [B, in_dim].
    """
    num_layers = len(params)
    B, in_dim = x.shape
    out_dim = params[-1][0].shape[1]

    # Common lane-dense feature dim (multiple of 128) shared by every layer.
    feat_dims = [in_dim] + [w.shape[1] for (w, _) in params]
    P = _round_up(max(feat_dims), 128)

    # Batch tiling: sublane-aligned, tiled over a "parallel" grid axis.
    B_pad = _round_up(max(B, 1), 8)
    tb = min(B_pad, block_b)
    B_pad = _round_up(B_pad, tb)

    # Pad & stack parameters: weights -> (L, P, P), biases -> (L, 1, P).
    w_stack = jnp.zeros((num_layers, P, P), dtype=x.dtype)
    b_stack = jnp.zeros((num_layers, 1, P), dtype=x.dtype)
    for l, (w, b) in enumerate(params):
        fi, fo = w.shape
        w_stack = w_stack.at[l, :fi, :fo].set(w.astype(x.dtype))
        b_stack = b_stack.at[l, 0, :fo].set(b.astype(x.dtype))

    # The fused design keeps the whole (double-buffered) weight stack in VMEM.
    # That is the right regime for MLP-sized layers; for very large weights a
    # tiled (M, N, K) grid per layer would be needed instead.
    # TODO(synk): tiled K/N grid path for weight stacks that exceed VMEM.
    weight_bytes = 2 * num_layers * P * P * jnp.dtype(x.dtype).itemsize
    if weight_bytes > 48 * 1024 * 1024:   # stay well inside v7x's 64 MiB VMEM
        raise NotImplementedError("weight stack too large for fused VMEM kernel")

    # Pad the activation to (B_pad, P); padding columns are zero and stay zero.
    x_pad = jnp.zeros((B_pad, P), dtype=x.dtype).at[:B, :in_dim].set(x)

    kernel = functools.partial(_dense_stack_kernel,
                               num_layers=num_layers,
                               compute_dtype=compute_dtype)

    vmem = pltpu.MemorySpace.VMEM
    out = pl.pallas_call(
        kernel,
        out_shape=jax.ShapeDtypeStruct((B_pad, P), x.dtype),
        grid=(B_pad // tb,),
        in_specs=[
            # activation tile marches over the batch axis
            pl.BlockSpec((tb, P), lambda i: (i, 0), memory_space=vmem),
            # full weight / bias stacks, identical for every grid step
            pl.BlockSpec((num_layers, P, P), lambda i: (0, 0, 0), memory_space=vmem),
            pl.BlockSpec((num_layers, 1, P), lambda i: (0, 0, 0), memory_space=vmem),
        ],
        out_specs=pl.BlockSpec((tb, P), lambda i: (i, 0), memory_space=vmem),
        compiler_params=pltpu.CompilerParams(
            dimension_semantics=("parallel",)),   # batch axis splits across TCs (v7x)
    )(x_pad, w_stack, b_stack)

    # Strip padding.
    return out[:B, :out_dim]


def init_dense_model_params(key, in_dim, num_hidden, out_dim, num_layers,
                            dtype=jnp.float32):
    """Deterministic init mimicking nn.Linear (uniform(-1/sqrt(fan_in), +...))."""
    if num_layers == 1:
        dims = [(in_dim, out_dim)]
    else:
        dims = [(in_dim, num_hidden)]
        for _ in range(1, num_layers - 1):
            dims.append((num_hidden, num_hidden))
        dims.append((num_hidden, out_dim))

    params = []
    for (fan_in, fan_out) in dims:
        key, kw, kb = jax.random.split(key, 3)
        bound = 1.0 / jnp.sqrt(jnp.asarray(fan_in, dtype))
        # stored as [in_dim, out_dim] (transpose of PyTorch's [out, in])
        w = jax.random.uniform(kw, (fan_in, fan_out), dtype, -bound, bound)
        b = jax.random.uniform(kb, (fan_out,), dtype, -bound, bound)
        params.append((w, b))
    return params


if __name__ == "__main__":
    # Small, module-consistent shapes.
    batch = 8
    in_dim = 32
    num_hidden = 32
    out_dim = 16
    num_layers = 3
    dropout = 0.1  # identity in eval mode

    key = jax.random.PRNGKey(0)
    kx, kp = jax.random.split(key)
    x = jax.random.normal(kx, (batch, in_dim), jnp.float32)

    params = init_dense_model_params(kp, in_dim, num_hidden, out_dim, num_layers)

    fwd = jax.jit(dense_model_forward)
    y = fwd(params, x)
    y = jax.block_until_ready(y)

    # Sanity check against plain-JAX reference (eval-mode dropout = identity).
    ref = x
    for l in range(num_layers - 1):
        w, b = params[l]
        ref = jnp.tanh(ref @ w + b)
    w, b = params[-1]
    ref = ref @ w + b

    assert y.shape == (batch, out_dim)
    assert jnp.allclose(y, ref, atol=2e-5, rtol=2e-5)
    print("KERNEL_OK")
</pallas_src>

<mosaic_0001>
module attributes {stable_mosaic.version = 11 : i64} {
  func.func @_dense_stack_kernel(%arg0: i32, %arg1: memref<8x128xf32, #tpu.memory_space<vmem>>, %arg2: memref<3x128x128xf32, #tpu.memory_space<vmem>>, %arg3: memref<3x1x128xf32, #tpu.memory_space<vmem>>, %arg4: memref<8x128xf32, #tpu.memory_space<vmem>>) attributes {dimension_semantics = [#tpu.dimension_semantics<parallel>], iteration_bounds = array<i64: 1>, scalar_prefetch = 0 : i64, scratch_operands = 0 : i64, tpu.core_type = #tpu.core_type<tc>, window_params = [{transform_indices = @transform_0, window_bounds = array<i64: 8, 128>}, {pipeline_mode = #tpu.pipeline_mode<synchronous>, transform_indices = @transform_1, window_bounds = array<i64: 3, 128, 128>}, {pipeline_mode = #tpu.pipeline_mode<synchronous>, transform_indices = @transform_2, window_bounds = array<i64: 3, 1, 128>}, {transform_indices = @transform_3, window_bounds = array<i64: 8, 128>}]} {
    %c0 = arith.constant 0 : index
    %c0_0 = arith.constant 0 : index
    %0 = vector.load %arg1[%c0, %c0_0] : memref<8x128xf32, #tpu.memory_space<vmem>>, vector<8x128xf32>
    %c0_1 = arith.constant 0 : index
    %c0_2 = arith.constant 0 : index
    %c0_3 = arith.constant 0 : index
    %1 = vector.load %arg2[%c0_1, %c0_2, %c0_3] : memref<3x128x128xf32, #tpu.memory_space<vmem>>, vector<1x128x128xf32>
    %2 = vector.shape_cast %1 : vector<1x128x128xf32> to vector<128x128xf32>
    %c0_4 = arith.constant 0 : index
    %c0_5 = arith.constant 0 : index
    %c0_6 = arith.constant 0 : index
    %3 = vector.load %arg3[%c0_4, %c0_5, %c0_6] : memref<3x1x128xf32, #tpu.memory_space<vmem>>, vector<1x1x128xf32>
    %4 = vector.shape_cast %3 : vector<1x1x128xf32> to vector<1x128xf32>
    %cst = arith.constant dense<0.000000e+00> : vector<8x128xf32>
    %5 = tpu.matmul %0, %2, %cst {dimension_numbers = #tpu.dot_dimension_numbers<[1], [0], [0], [1], [0, 0, 1, 1], [], []>} : vector<8x128xf32>, vector<128x128xf32>, vector<8x128xf32> -> vector<8x128xf32>
    %6 = vector.broadcast %4 : vector<1x128xf32> to vector<8x128xf32>
    %7 = arith.addf %5, %6 : vector<8x128xf32>
    %8 = math.tanh %7 : vector<8x128xf32>
    %c1 = arith.constant 1 : index
    %c0_7 = arith.constant 0 : index
    %c0_8 = arith.constant 0 : index
    %9 = vector.load %arg2[%c1, %c0_7, %c0_8] : memref<3x128x128xf32, #tpu.memory_space<vmem>>, vector<1x128x128xf32>
    %10 = vector.shape_cast %9 : vector<1x128x128xf32> to vector<128x128xf32>
    %c1_9 = arith.constant 1 : index
    %c0_10 = arith.constant 0 : index
    %c0_11 = arith.constant 0 : index
    %11 = vector.load %arg3[%c1_9, %c0_10, %c0_11] : memref<3x1x128xf32, #tpu.memory_space<vmem>>, vector<1x1x128xf32>
    %12 = vector.shape_cast %11 : vector<1x1x128xf32> to vector<1x128xf32>
    %cst_12 = arith.constant dense<0.000000e+00> : vector<8x128xf32>
    %13 = tpu.matmul %8, %10, %cst_12 {dimension_numbers = #tpu.dot_dimension_numbers<[1], [0], [0], [1], [0, 0, 1, 1], [], []>} : vector<8x128xf32>, vector<128x128xf32>, vector<8x128xf32> -> vector<8x128xf32>
    %14 = vector.broadcast %12 : vector<1x128xf32> to vector<8x128xf32>
    %15 = arith.addf %13, %14 : vector<8x128xf32>
    %16 = math.tanh %15 : vector<8x128xf32>
    %c2 = arith.constant 2 : index
    %c0_13 = arith.constant 0 : index
    %c0_14 = arith.constant 0 : index
    %17 = vector.load %arg2[%c2, %c0_13, %c0_14] : memref<3x128x128xf32, #tpu.memory_space<vmem>>, vector<1x128x128xf32>
    %18 = vector.shape_cast %17 : vector<1x128x128xf32> to vector<128x128xf32>
    %c2_15 = arith.constant 2 : index
    %c0_16 = arith.constant 0 : index
    %c0_17 = arith.constant 0 : index
    %19 = vector.load %arg3[%c2_15, %c0_16, %c0_17] : memref<3x1x128xf32, #tpu.memory_space<vmem>>, vector<1x1x128xf32>
    %20 = vector.shape_cast %19 : vector<1x1x128xf32> to vector<1x128xf32>
    %cst_18 = arith.constant dense<0.000000e+00> : vector<8x128xf32>
    %21 = tpu.matmul %16, %18, %cst_18 {dimension_numbers = #tpu.dot_dimension_numbers<[1], [0], [0], [1], [0, 0, 1, 1], [], []>} : vector<8x128xf32>, vector<128x128xf32>, vector<8x128xf32> -> vector<8x128xf32>
    %22 = vector.broadcast %20 : vector<1x128xf32> to vector<8x128xf32>
    %23 = arith.addf %21, %22 : vector<8x128xf32>
    %c0_19 = arith.constant 0 : index
    %c0_20 = arith.constant 0 : index
    %24 = vector.load %arg4[%c0_19, %c0_20] : memref<8x128xf32, #tpu.memory_space<vmem>>, vector<8x128xf32>
    tpu.vector_store %arg4[%c0_19, %c0_20], %23 {strides = array<i32>} : memref<8x128xf32, #tpu.memory_space<vmem>>, vector<8x128xf32>,
    return
  }
  func.func @transform_0(%arg0: i32) -> (i32, i32) {
    %c0_i32 = arith.constant 0 : i32
    %c0_i32_0 = arith.constant 0 : i32
    return %arg0, %c0_i32 : i32, i32
  }
  func.func @transform_1(%arg0: i32) -> (i32, i32, i32) {
    %c0_i32 = arith.constant 0 : i32
    %c0_i32_0 = arith.constant 0 : i32
    %c0_i32_1 = arith.constant 0 : i32
    %c0_i32_2 = arith.constant 0 : i32
    return %c0_i32, %c0_i32_0, %c0_i32_1 : i32, i32, i32
  }
  func.func @transform_2(%arg0: i32) -> (i32, i32, i32) {
    %c0_i32 = arith.constant 0 : i32
    %c0_i32_0 = arith.constant 0 : i32
    %c0_i32_1 = arith.constant 0 : i32
    %c0_i32_2 = arith.constant 0 : i32
    return %c0_i32, %c0_i32_0, %c0_i32_1 : i32, i32, i32
  }
  func.func @transform_3(%arg0: i32) -> (i32, i32) {
    %c0_i32 = arith.constant 0 : i32
    %c0_i32_0 = arith.constant 0 : i32
    return %arg0, %c0_i32 : i32, i32
  }
}

</mosaic_0001>

<bundles_post_ra>
// kernel: dense_model_forward.1
= control target key start
LH: loop header
LB: loop body
LE: loop exit
PB: predicated region body
PF: predicated region fallthrough
CT: control target
= control target key end

     0   :  { %v538_v1 = vmov 0.0   ;;  %vm539_vm0 = vmmov 0   ;;  %s774_s0 = inlined_call_operand.vmem [shape: f32[8,128], index: 0, kind: input, shape index: {}]   ;;  %s775_s1 = inlined_call_operand.vmem [shape: f32[3,128,128], index: 1, kind: input, shape index: {}]   ;;  %s776_s2 = inlined_call_operand.vmem [shape: f32[3,1,128], index: 2, kind: input, shape index: {}]   ;;  %s777_s3 = inlined_call_operand.hbm [shape: f32[8,128], index: 3, kind: output, shape index: {}]  }
   0x1   :  { %v31_v0 = vld [vmem:[%s775_s1 + $0x78] sm:$0xff]  ;;  %404 = vmatprep.subr.mxu0 %v538_v1  ;;  %v30_v2 = vld [vmem:[%s775_s1 + $0x70] sm:$0xff]  ;;  %436 = vmatprep.mubr.msk.f32.mxu0 %vm539_vm0, %v538_v1  ;;  %v29_v3 = vld [vmem:[%s775_s1 + $0x68] sm:$0xff] }
   0x2   :  { %405 = vmatpush3.msra.mxu0 %v31_v0  ;;  %439 = vmatprep.subr.mxu1 %v538_v1  ;;  %v28_v4 = vld [vmem:[%s775_s1 + $0x60] sm:$0xff]  ;;  %v332_v5 = vld [vmem:[%s775_s1 + $0xf8] sm:$0xff]  ;;  %v331_v6 = vld [vmem:[%s775_s1 + $0xf0] sm:$0xff] }
   0x3   :  { %406 = vmatprep.subr.mxu0 %v538_v1  ;;  %471 = vmatprep.mubr.msk.f32.mxu1 %vm539_vm0, %v538_v1  ;;  %v27_v7 = vld [vmem:[%s775_s1 + $0x58] sm:$0xff]  ;;  %v330_v8 = vld [vmem:[%s775_s1 + $0xe8] sm:$0xff] }
   0x4   :  { %407 = vmatpush3.msra.mxu0 %v30_v2  ;;  %440 = vmatpush3.msra.mxu1 %v332_v5 }
   0x5   :  { %408 = vmatprep.subr.mxu0 %v538_v1  ;;  %441 = vmatprep.subr.mxu1 %v538_v1 }
   0x6   :  { %409 = vmatpush3.msra.mxu0 %v29_v3  ;;  %442 = vmatpush3.msra.mxu1 %v331_v6 }
   0x7   :  { %410 = vmatprep.subr.mxu0 %v538_v1 }
   0x8   :  { %411 = vmatpush3.msra.mxu0 %v28_v4 }
   0x9   :  { %8 = vsyncpa [#allocation3], 0  ;;  %412 = vmatprep.subr.mxu0 %v538_v1  ;;  %v26_v9 = vld [vmem:[%s775_s1 + $0x50] sm:$0xff]  ;;  %443 = vmatprep.subr.mxu1 %v538_v1  ;;  %v329_v10 = vld [vmem:[%s775_s1 + $0xe0] sm:$0xff]  ;;  %s540_s6 = smov [#allocation2]  }
   0xa   :  { %413 = vmatpush3.msra.mxu0 %v27_v7  ;;  %444 = vmatpush3.msra.mxu1 %v330_v8  ;;  %v25_v11 = vld [vmem:[%s775_s1 + $0x48] sm:$0xff]  ;;  %v328_v12 = vld [vmem:[%s775_s1 + $0xd8] sm:$0xff]  ;;  %v24_v13 = vld [vmem:[%s775_s1 + $0x40] sm:$0xff] }
   0xb   :  { %414 = vmatprep.subr.mxu0 %v538_v1  ;;  %445 = vmatprep.subr.mxu1 %v538_v1  ;;  %v327_v14 = vld [vmem:[%s775_s1 + $0xd0] sm:$0xff]  ;;  %v23_v15 = vld [vmem:[%s775_s1 + $0x38] sm:$0xff]  ;;  %v326_v16 = vld [vmem:[%s775_s1 + $0xc8] sm:$0xff] }
   0xc   :  { %415 = vmatpush3.msra.mxu0 %v26_v9  ;;  %446 = vmatpush3.msra.mxu1 %v329_v10  ;;  %v22_v17 = vld [vmem:[%s775_s1 + $0x30] sm:$0xff]  ;;  %v21_v18 = vld [vmem:[%s775_s1 + $0x28] sm:$0xff]  ;;  %v20_v19 = vld [vmem:[%s775_s1 + $0x20] sm:$0xff] }
   0xd   :  { %416 = vmatprep.subr.mxu0 %v538_v1  ;;  %447 = vmatprep.subr.mxu1 %v538_v1  ;;  %v19_v20 = vld [vmem:[%s775_s1 + $0x18] sm:$0xff]  ;;  %v18_v21 = vld [vmem:[%s775_s1 + $0x10] sm:$0xff]  ;;  %v17_v22 = vld [vmem:[%s775_s1 + $0x8] sm:$0xff] }
   0xe   :  { %417 = vmatpush3.msra.mxu0 %v25_v11  ;;  %448 = vmatpush3.msra.mxu1 %v328_v12  ;;  %v16_v23 = vld [vmem:[%s775_s1] sm:$0xff]  ;;  %v324_v26 = vld [vmem:[%s775_s1 + $0xb8] sm:$0xff]  ;;  %v323_v27 = vld [vmem:[%s775_s1 + $0xb0] sm:$0xff] }
   0xf   :  { %418 = vmatprep.subr.mxu0 %v538_v1  ;;  %449 = vmatprep.subr.mxu1 %v538_v1  ;;  %v15_v24 = vld [vmem:[%s774_s0] sm:$0xff]  ;;  %v322_v28 = vld [vmem:[%s775_s1 + $0xa8] sm:$0xff]  ;;  %v320_v30 = vld [vmem:[%s775_s1 + $0x98] sm:$0xff] }
  0x10   :  { %419 = vmatpush3.msra.mxu0 %v24_v13  ;;  %450 = vmatpush3.msra.mxu1 %v327_v14  ;;  %v325_v25 = vld [vmem:[%s775_s1 + $0xc0] sm:$0xff]  ;;  %v319_v31 = vld [vmem:[%s775_s1 + $0x90] sm:$0xff]  ;;  %v318_v32 = vld [vmem:[%s775_s1 + $0x88] sm:$0xff] }
  0x11   :  { %420 = vmatprep.subr.mxu0 %v538_v1  ;;  %451 = vmatprep.subr.mxu1 %v538_v1  ;;  %v321_v29 = vld [vmem:[%s775_s1 + $0xa0] sm:$0xff]  ;;  %v350_v34 = vld [vmem:[%s775_s1 + $0x178] sm:$0xff]  ;;  %v349_v35 = vld [vmem:[%s775_s1 + $0x170] sm:$0xff] }
  0x12   :  { %421 = vmatpush3.msra.mxu0 %v23_v15  ;;  %452 = vmatpush3.msra.mxu1 %v326_v16  ;;  %v317_v33 = vld [vmem:[%s775_s1 + $0x80] sm:$0xff]  ;;  %v348_v36 = vld [vmem:[%s775_s1 + $0x168] sm:$0xff]  ;;  %v346_v38 = vld [vmem:[%s775_s1 + $0x158] sm:$0xff] }
  0x13   :  { %422 = vmatprep.subr.mxu0 %v538_v1  ;;  %453 = vmatprep.subr.mxu1 %v538_v1  ;;  %v347_v37 = vld [vmem:[%s775_s1 + $0x160] sm:$0xff]  ;;  %v345_v39 = vld [vmem:[%s775_s1 + $0x150] sm:$0xff]  ;;  %v344_v40 = vld [vmem:[%s775_s1 + $0x148] sm:$0xff] }
  0x14   :  { %423 = vmatpush3.msra.mxu0 %v22_v17  ;;  %454 = vmatpush3.msra.mxu1 %v325_v25  ;;  %v316_v41 = vld [vmem:[%s776_s2] ss:$0 sm:$0xff]  ;;  %v342_v47 = vld [vmem:[%s775_s1 + $0x138] sm:$0xff]  ;;  %v341_v48 = vld [vmem:[%s775_s1 + $0x130] sm:$0xff] }
  0x15   :  { %424 = vmatprep.subr.mxu0 %v538_v1  ;;  %455 = vmatprep.subr.mxu1 %v538_v1  ;;  %v343_v46 = vld [vmem:[%s775_s1 + $0x140] sm:$0xff]  ;;  %v340_v49 = vld [vmem:[%s775_s1 + $0x128] sm:$0xff]  ;;  %v338_v51 = vld [vmem:[%s775_s1 + $0x118] sm:$0xff] }
  0x16   :  { %425 = vmatpush3.msra.mxu0 %v21_v18  ;;  %456 = vmatpush3.msra.mxu1 %v324_v26  ;;  %v339_v50 = vld [vmem:[%s775_s1 + $0x120] sm:$0xff]  ;;  %v337_v52 = vld [vmem:[%s775_s1 + $0x110] sm:$0xff]  ;;  %v336_v53 = vld [vmem:[%s775_s1 + $0x108] sm:$0xff] }
  0x17   :  { %426 = vmatprep.subr.mxu0 %v538_v1  ;;  %457 = vmatprep.subr.mxu1 %v538_v1  ;;  %v335_v54 = vld [vmem:[%s775_s1 + $0x100] sm:$0xff]  ;;  %s308_s1 = sshll.u32 %s540_s6, 4  ;;  %s309_s1 = int_to_ptr.vmem [resolvable:$true] %s308_s1 }
  0x18   :  { %427 = vmatpush3.msra.mxu0 %v20_v19  ;;  %458 = vmatpush3.msra.mxu1 %v323_v27  ;;  %v334_v55 = vld [vmem:[%s776_s2 + $0x1] ss:$0 sm:$0xff]  ;;  %v352_v60 = vld [vmem:[%s776_s2 + $0x2] ss:$0 sm:$0xff]  ;;  %s516_s7 = scalar_lea.vmem %s309_s1, 128  ;;  %p521_p1 = scmp.lt.s32.totalorder %s309_s1, %s309_s1 }
  0x19   :  { %428 = vmatprep.subr.mxu0 %v538_v1  ;;  %459 = vmatprep.subr.mxu1 %v538_v1  ;;  %p517_p0 = scmp.ne.s32.totalorder %s309_s1, %s516_s7  ;;  %p522_p2 = scmp.lt.s32.totalorder %s516_s7, %s516_s7 }
  0x1a   :  { %429 = vmatpush3.msra.mxu0 %v19_v20  ;;  %460 = vmatpush3.msra.mxu1 %v322_v28 }
  0x1b   :  { %430 = vmatprep.subr.mxu0 %v538_v1  ;;  %461 = vmatprep.subr.mxu1 %v538_v1  ;;  %p523_p3 = por %p522_p2, %p521_p1 }
  0x1c   :  { %431 = vmatpush3.msra.mxu0 %v18_v21  ;;  %462 = vmatpush3.msra.mxu1 %v321_v29 }
  0x1d   :  { %432 = vmatprep.subr.mxu0 %v538_v1  ;;  %463 = vmatprep.subr.mxu1 %v538_v1  ;;  %p524_p4 = pnand %p523_p3, %p517_p0 }
  0x1e   :  { %433 = vmatpush3.msra.mxu0 %v17_v22  ;;  %464 = vmatpush3.msra.mxu1 %v320_v30 }
  0x1f   :  { %434 = vmatprep.subr.mxu0 %v538_v1  ;;  %465 = vmatprep.subr.mxu1 %v538_v1 }
  0x20   :  { %435 = vmatpush3.msra.mxu0 %v16_v23  ;;  %466 = vmatpush3.msra.mxu1 %v319_v31 }
  0x21   :  { %437 = vmatmul.mubr.f32.vlgmr.msra.gmra.mxu0 %v15_v24  ;;  %474 = vmatprep.subr.mxu0 %v538_v1 }
  0x22   :  { %506 = vmatprep.mubr.msk.f32.mxu0 %vm539_vm0, %v538_v1  ;;  %467 = vmatprep.subr.mxu1 %v538_v1 }
  0x23   :  { %468 = vmatpush3.msra.mxu1 %v318_v32  ;;  %475 = vmatpush3.msra.mxu0 %v350_v34 }
  0x24   :  { %469 = vmatprep.subr.mxu1 %v538_v1  ;;  %476 = vmatprep.subr.mxu0 %v538_v1 }
  0x25   :  { %470 = vmatpush3.msra.mxu1 %v317_v33  ;;  %477 = vmatpush3.msra.mxu0 %v349_v35 }
  0x26   :  { %478 = vmatprep.subr.mxu0 %v538_v1 }
  0x27   :  { %479 = vmatpush3.msra.mxu0 %v348_v36 }
  0x28   :  { %480 = vmatprep.subr.mxu0 %v538_v1 }
  0x29   :  { %481 = vmatpush3.msra.mxu0 %v347_v37 }
  0x2a   :  { %482 = vmatprep.subr.mxu0 %v538_v1 }
  0x2b   :  { %483 = vmatpush3.msra.mxu0 %v346_v38 }
  0x2c   :  { %484 = vmatprep.subr.mxu0 %v538_v1 }
  0x2d   :  { %485 = vmatpush3.msra.mxu0 %v345_v39 }
  0x2e   :  { %486 = vmatprep.subr.mxu0 %v538_v1 }
  0x2f   :  { %487 = vmatpush3.msra.mxu0 %v344_v40 }
  0x30   :  { %488 = vmatprep.subr.mxu0 %v538_v1 }
  0x31   :  { %489 = vmatpush3.msra.mxu0 %v343_v46 }
  0x32   :  { %490 = vmatprep.subr.mxu0 %v538_v1 }
  0x33   :  { %491 = vmatpush3.msra.mxu0 %v342_v47 }
  0x34   :  { %492 = vmatprep.subr.mxu0 %v538_v1 }
  0x35   :  { %493 = vmatpush3.msra.mxu0 %v341_v48 }
  0x36   :  { %494 = vmatprep.subr.mxu0 %v538_v1 }
  0x37   :  { %495 = vmatpush3.msra.mxu0 %v340_v49 }
  0x38   :  { %496 = vmatprep.subr.mxu0 %v538_v1 }
  0x39   :  { %497 = vmatpush3.msra.mxu0 %v339_v50 }
  0x3a   :  { %498 = vmatprep.subr.mxu0 %v538_v1 }
  0x3b   :  { %499 = vmatpush3.msra.mxu0 %v338_v51 }
  0x3c   :  { %500 = vmatprep.subr.mxu0 %v538_v1 }
  0x3d   :  { %501 = vmatpush3.msra.mxu0 %v337_v52 }
  0x3e   :  { %502 = vmatprep.subr.mxu0 %v538_v1 }
  0x3f   :  { %503 = vmatpush3.msra.mxu0 %v336_v53 }
  0x40   :  { %504 = vmatprep.subr.mxu0 %v538_v1 }
  0x41   :  { %505 = vmatpush3.msra.mxu0 %v335_v54 }
  0xe1   :  { %v105_v42 = vpop.f32.mrf.mxu0 }
  0xe2   :  { %v106_v43 = vadd.f32 %v316_v41, %v105_v42 }
  0xe3   :  { %v438_v44 = vpop.f32.mrf.mxu0 }
  0xe4   :  { %512 = vtanh.f32 %v106_v43 }
  0xf1   :  { %v513_v45 = vpop.eup %512 }
  0xf2   :  { %472 = vmatmul.mubr.f32.vlgmr.msra.gmra.mxu1 %v513_v45 }
 0x1b2   :  { %v201_v56 = vpop.f32.mrf.mxu1 }
 0x1b3   :  { %v202_v57 = vadd.f32 %v334_v55, %v201_v56 }
 0x1b4   :  { %v473_v58 = vpop.f32.mrf.mxu1 }
 0x1b5   :  { %514 = vtanh.f32 %v202_v57 }
 0x1c2   :  { %v515_v59 = vpop.eup %514 }
 0x1c3   :  { %507 = vmatmul.mubr.f32.vlgmr.msra.gmra.mxu0 %v515_v59 }
 0x283   :  { %v297_v61 = vpop.f32.mrf.mxu0 }
 0x284   :  { %v298_v62 = vadd.f32 %v352_v60, %v297_v61 }
 0x285   :  { %v508_v63 = vpop.f32.mrf.mxu0 }
 0x286   :  { %301 = vst [vmem:[#allocation2] sm:$0xff] %v298_v62 }
 0x287   :  { %527 = shalt.err (!%p524_p4)
}
 0x288   :  { %311 = dma.vmem_to_hbm [thread:$0]  %s309_s1, 128, %s777_s3, [#allocation3]  }
 0x289   :  { %536 = dma.done.wait [#allocation3], 128  }
 0x28a   :  { %537 = vsyncadd [#allocation3], 4294967168 }
 0x28b   :  { %315 = vsyncpa [#allocation3], 1 }

</bundles_post_ra>
